<compile_context>
chip_gen: v5e
topology: v5e:2x2
jax: 0.10.0
libtpu: 0.0.40
codegen_flags: <defaults>
</compile_context>

<pallas_src>
import functools

import jax
import jax.numpy as jnp
from jax.experimental import pallas as pl
from jax.experimental.pallas import tpu as pltpu

BN_EPS = 1e-5


def bnlinear_kernel(x_ref, w_ref, gamma_ref, beta_ref, o_ref, acc_ref):
    k = pl.program_id(1)

    @pl.when(k == 0)
    def _init():
        acc_ref[...] = jnp.zeros_like(acc_ref)

    # MXU matmul: bf16 operands, f32 accumulation into resident VMEM scratch.
    acc_ref[...] += jnp.dot(
        x_ref[...], w_ref[...], preferred_element_type=jnp.float32
    )

    @pl.when(k == pl.num_programs(1) - 1)
    def _finalize():
        y = acc_ref[...]                                   # (N, TN) f32
        inv_n = 1.0 / y.shape[0]

        # One-pass batch statistics (biased variance, as BatchNorm1d training mode).
        mean = jnp.sum(y, axis=0, keepdims=True) * inv_n
        mean_sq = jnp.sum(y * y, axis=0, keepdims=True) * inv_n
        var = jnp.maximum(mean_sq - mean * mean, 0.0)

        # Fold BN normalization + affine into one per-column scale/shift (one FMA).
        scale = gamma_ref[...] * jax.lax.rsqrt(var + BN_EPS)   # (1, TN)
        shift = beta_ref[...] - scale * mean                   # (1, TN)
        z = y * scale + shift

        # SiLU / swish (sigmoid hits the EUP slot; mul is VPU).
        o_ref[...] = (z * jax.nn.sigmoid(z)).astype(o_ref.dtype)


def _pick_tile(dim, target):
    """Largest multiple of 128 that divides `dim` and is <= target; else full dim."""
    if dim % 128 != 0:
        return dim
    t = min((max(target, 128) // 128) * 128, dim)
    while dim % t != 0:
        t -= 128
    return t


@functools.partial(jax.jit, static_argnames=("tn_target", "tk_target", "out_dtype"))
def bn_linear(x, w_t, b, gamma, beta, *, tn_target=512, tk_target=512,
              out_dtype=jnp.float32):
    """x: (N, in_dim); w_t: (in_dim, out_dim); b/gamma/beta: (out_dim,).

    `b` is accepted for API parity with the PyTorch module but is NOT used:
    training-mode BatchNorm's mean subtraction cancels the Linear bias exactly.
    """
    del b  # cancelled by BN mean subtraction (training mode)
    n, in_dim = x.shape
    out_dim = w_t.shape[1]

    tn = _pick_tile(out_dim, tn_target)
    tk = _pick_tile(in_dim, tk_target)
    grid = (out_dim // tn, in_dim // tk)

    # bf16 matmul operands (f32 accumulation in-kernel); f32 BN/affine params.
    x_bf = x.astype(jnp.bfloat16)
    w_bf = w_t.astype(jnp.bfloat16)
    gamma2 = gamma.reshape(1, out_dim).astype(jnp.float32)
    beta2 = beta.reshape(1, out_dim).astype(jnp.float32)

    # Rough double-buffered VMEM footprint; 2x headroom, clamped to a safe range
    # (>= v5e scoped default, <= v7x physical VMEM per core).
    est = (2 * (n * tk + tk * tn) * 2      # bf16 inputs, double-buffered
           + 2 * n * tn * 4                # f32 output, double-buffered
           + n * tn * 4                    # f32 accumulator scratch
           + 4 * tn * 4)                   # gamma/beta (double-buffered)
    vmem_limit = int(min(max(2 * est, 16 << 20), 64 << 20))

    return pl.pallas_call(
        bnlinear_kernel,
        out_shape=jax.ShapeDtypeStruct((n, out_dim), out_dtype),
        grid_spec=pltpu.PrefetchScalarGridSpec(
            num_scalar_prefetch=0,
            grid=grid,                                        # (feature tiles, K tiles)
            in_specs=[
                pl.BlockSpec((n, tk), lambda j, k: (0, k)),   # x: full batch, K chunk
                pl.BlockSpec((tk, tn), lambda j, k: (k, j)),  # w_t: K chunk x feature tile
                pl.BlockSpec((1, tn), lambda j, k: (0, j)),   # gamma
                pl.BlockSpec((1, tn), lambda j, k: (0, j)),   # beta
            ],
            out_specs=pl.BlockSpec((n, tn), lambda j, k: (0, j)),
            scratch_shapes=[pltpu.VMEM((n, tn), jnp.float32)],
        ),
        compiler_params=pltpu.CompilerParams(
            dimension_semantics=("parallel", "arbitrary"),
            vmem_limit_bytes=vmem_limit,
        ),
    )(x_bf, w_bf, gamma2, beta2)


def init_params(key, in_dim, out_dim):
    kw, kb = jax.random.split(key)
    # xavier_uniform_ on Linear.weight (shape (out_dim, in_dim))
    bound_w = (6.0 / (in_dim + out_dim)) ** 0.5
    w = jax.random.uniform(kw, (out_dim, in_dim), jnp.float32, -bound_w, bound_w)
    # PyTorch Linear default bias init: U(-1/sqrt(in_dim), 1/sqrt(in_dim))
    bound_b = 1.0 / (in_dim ** 0.5)
    b = jax.random.uniform(kb, (out_dim,), jnp.float32, -bound_b, bound_b)
    # BatchNorm1d affine params
    gamma = jnp.ones((out_dim,), jnp.float32)
    beta = jnp.zeros((out_dim,), jnp.float32)
    return w, b, gamma, beta


if __name__ == "__main__":
    key = jax.random.PRNGKey(0)
    k_x, k_p = jax.random.split(key)

    batch, in_dim, out_dim = 8, 32, 128
    x = jax.random.normal(k_x, (batch, in_dim), jnp.float32)
    w, b, gamma, beta = init_params(k_p, in_dim, out_dim)

    out = bn_linear(x, w.T, b, gamma, beta)   # w.T: (in_dim, out_dim)
    jax.block_until_ready(out)

    # Reference (full f32, including the bias — BN training mode cancels it).
    y_ref = x @ w.T + b
    mean = y_ref.mean(axis=0, keepdims=True)
    var = ((y_ref - mean) ** 2).mean(axis=0, keepdims=True)
    z_ref = gamma * (y_ref - mean) / jnp.sqrt(var + BN_EPS) + beta
    ref = z_ref * jax.nn.sigmoid(z_ref)

    # bf16 matmul operands -> loosened tolerance (~1e-2 relative).
    assert jnp.allclose(out, ref, atol=5e-2, rtol=5e-2), "mismatch vs reference"

    print("KERNEL_OK")
</pallas_src>

<mosaic_0001>
module attributes {stable_mosaic.version = 11 : i64} {
  func.func @bnlinear_kernel(%arg0: i32, %arg1: i32, %arg2: memref<8x32xbf16, #tpu.memory_space<vmem>>, %arg3: memref<32x128xbf16, #tpu.memory_space<vmem>>, %arg4: memref<1x128xf32, #tpu.memory_space<vmem>>, %arg5: memref<1x128xf32, #tpu.memory_space<vmem>>, %arg6: memref<8x128xf32, #tpu.memory_space<vmem>>, %arg7: memref<8x128xf32, #tpu.memory_space<vmem>>) attributes {dimension_semantics = [#tpu.dimension_semantics<parallel>, #tpu.dimension_semantics<arbitrary>], iteration_bounds = array<i64: 1, 1>, scalar_prefetch = 0 : i64, scratch_operands = 1 : i64, tpu.core_type = #tpu.core_type<tc>, window_params = [{transform_indices = @transform_0, window_bounds = array<i64: 8, 32>}, {transform_indices = @transform_1, window_bounds = array<i64: 32, 128>}, {transform_indices = @transform_2, window_bounds = array<i64: 1, 128>}, {transform_indices = @transform_3, window_bounds = array<i64: 1, 128>}, {transform_indices = @transform_4, window_bounds = array<i64: 8, 128>}]} {
    %c0_i32 = arith.constant 0 : i32
    %0 = arith.cmpi eq, %arg1, %c0_i32 : i32
    %1 = arith.extui %0 : i1 to i32
    %c0_i32_0 = arith.constant 0 : i32
    %2 = arith.cmpi ne, %1, %c0_i32_0 : i32
    scf.if %2 {
      %cst_10 = arith.constant 0.000000e+00 : f32
      %12 = vector.broadcast %cst_10 : f32 to vector<8x128xf32>
      %c0_11 = arith.constant 0 : index
      %c0_12 = arith.constant 0 : index
      %13 = vector.load %arg7[%c0_11, %c0_12] : memref<8x128xf32, #tpu.memory_space<vmem>>, vector<8x128xf32>
      tpu.vector_store %arg7[%c0_11, %c0_12], %12 {strides = array<i32>} : memref<8x128xf32, #tpu.memory_space<vmem>>, vector<8x128xf32>,
    } else {
    }
    %c0 = arith.constant 0 : index
    %c0_1 = arith.constant 0 : index
    %3 = vector.load %arg7[%c0, %c0_1] : memref<8x128xf32, #tpu.memory_space<vmem>>, vector<8x128xf32>
    %c0_2 = arith.constant 0 : index
    %c0_3 = arith.constant 0 : index
    %4 = vector.load %arg2[%c0_2, %c0_3] : memref<8x32xbf16, #tpu.memory_space<vmem>>, vector<8x32xbf16>
    %c0_4 = arith.constant 0 : index
    %c0_5 = arith.constant 0 : index
    %5 = vector.load %arg3[%c0_4, %c0_5] : memref<32x128xbf16, #tpu.memory_space<vmem>>, vector<32x128xbf16>
    %cst = arith.constant dense<0.000000e+00> : vector<8x128xf32>
    %6 = tpu.matmul %4, %5, %cst {dimension_numbers = #tpu.dot_dimension_numbers<[1], [0], [0], [1], [0, 0, 1, 1], [], []>} : vector<8x32xbf16>, vector<32x128xbf16>, vector<8x128xf32> -> vector<8x128xf32>
    %7 = arith.addf %3, %6 : vector<8x128xf32>
    %c0_6 = arith.constant 0 : index
    %c0_7 = arith.constant 0 : index
    %8 = vector.load %arg7[%c0_6, %c0_7] : memref<8x128xf32, #tpu.memory_space<vmem>>, vector<8x128xf32>
    tpu.vector_store %arg7[%c0_6, %c0_7], %7 {strides = array<i32>} : memref<8x128xf32, #tpu.memory_space<vmem>>, vector<8x128xf32>,
    %c0_i32_8 = arith.constant 0 : i32
    %9 = arith.cmpi eq, %arg1, %c0_i32_8 : i32
    %10 = arith.extui %9 : i1 to i32
    %c0_i32_9 = arith.constant 0 : i32
    %11 = arith.cmpi ne, %10, %c0_i32_9 : i32
    scf.if %11 {
      %c0_10 = arith.constant 0 : index
      %c0_11 = arith.constant 0 : index
      %12 = vector.load %arg7[%c0_10, %c0_11] : memref<8x128xf32, #tpu.memory_space<vmem>>, vector<8x128xf32>
      %cst_12 = arith.constant dense<0.000000e+00> : vector<128xf32>
      %13 = vector.multi_reduction <add>, %12, %cst_12 [0] : vector<8x128xf32> to vector<128xf32>
      %14 = vector.shape_cast %13 : vector<128xf32> to vector<1x128xf32>
      %cst_13 = arith.constant 1.250000e-01 : f32
      %15 = vector.broadcast %cst_13 : f32 to vector<1x128xf32>
      %16 = arith.mulf %14, %15 : vector<1x128xf32>
      %17 = arith.mulf %12, %12 : vector<8x128xf32>
      %cst_14 = arith.constant dense<0.000000e+00> : vector<128xf32>
      %18 = vector.multi_reduction <add>, %17, %cst_14 [0] : vector<8x128xf32> to vector<128xf32>
      %19 = vector.shape_cast %18 : vector<128xf32> to vector<1x128xf32>
      %cst_15 = arith.constant 1.250000e-01 : f32
      %20 = vector.broadcast %cst_15 : f32 to vector<1x128xf32>
      %21 = arith.mulf %19, %20 : vector<1x128xf32>
      %22 = arith.mulf %16, %16 : vector<1x128xf32>
      %23 = arith.subf %21, %22 : vector<1x128xf32>
      %cst_16 = arith.constant 0.000000e+00 : f32
      %24 = vector.broadcast %cst_16 : f32 to vector<1x128xf32>
      %25 = arith.maximumf %23, %24 : vector<1x128xf32>
      %c0_17 = arith.constant 0 : index
      %c0_18 = arith.constant 0 : index
      %26 = vector.load %arg4[%c0_17, %c0_18] : memref<1x128xf32, #tpu.memory_space<vmem>>, vector<1x128xf32>
      %cst_19 = arith.constant 9.99999974E-6 : f32
      %27 = vector.broadcast %cst_19 : f32 to vector<1x128xf32>
      %28 = arith.addf %25, %27 : vector<1x128xf32>
      %29 = math.rsqrt %28 : vector<1x128xf32>
      %30 = arith.mulf %26, %29 : vector<1x128xf32>
      %c0_20 = arith.constant 0 : index
      %c0_21 = arith.constant 0 : index
      %31 = vector.load %arg5[%c0_20, %c0_21] : memref<1x128xf32, #tpu.memory_space<vmem>>, vector<1x128xf32>
      %32 = arith.mulf %30, %16 : vector<1x128xf32>
      %33 = arith.subf %31, %32 : vector<1x128xf32>
      %34 = vector.broadcast %30 : vector<1x128xf32> to vector<8x128xf32>
      %35 = arith.mulf %12, %34 : vector<8x128xf32>
      %36 = vector.broadcast %33 : vector<1x128xf32> to vector<8x128xf32>
      %37 = arith.addf %35, %36 : vector<8x128xf32>
      %38 = arith.negf %37 : vector<8x128xf32>
      %39 = math.exp %38 : vector<8x128xf32>
      %cst_22 = arith.constant 1.000000e+00 : f32
      %40 = vector.broadcast %cst_22 : f32 to vector<8x128xf32>
      %41 = arith.addf %40, %39 : vector<8x128xf32>
      %42 = arith.divf %40, %41 : vector<8x128xf32>
      %43 = arith.mulf %37, %42 : vector<8x128xf32>
      %c0_23 = arith.constant 0 : index
      %c0_24 = arith.constant 0 : index
      %44 = vector.load %arg6[%c0_23, %c0_24] : memref<8x128xf32, #tpu.memory_space<vmem>>, vector<8x128xf32>
      tpu.vector_store %arg6[%c0_23, %c0_24], %43 {strides = array<i32>} : memref<8x128xf32, #tpu.memory_space<vmem>>, vector<8x128xf32>,
    } else {
    }
    return
  }
  func.func @transform_0(%arg0: i32, %arg1: i32) -> (i32, i32) {
    %c0_i32 = arith.constant 0 : i32
    %c0_i32_0 = arith.constant 0 : i32
    return %c0_i32, %arg1 : i32, i32
  }
  func.func @transform_1(%arg0: i32, %arg1: i32) -> (i32, i32) {
    %c0_i32 = arith.constant 0 : i32
    return %arg1, %arg0 : i32, i32
  }
  func.func @transform_2(%arg0: i32, %arg1: i32) -> (i32, i32) {
    %c0_i32 = arith.constant 0 : i32
    %c0_i32_0 = arith.constant 0 : i32
    return %c0_i32, %arg0 : i32, i32
  }
  func.func @transform_3(%arg0: i32, %arg1: i32) -> (i32, i32) {
    %c0_i32 = arith.constant 0 : i32
    %c0_i32_0 = arith.constant 0 : i32
    return %c0_i32, %arg0 : i32, i32
  }
  func.func @transform_4(%arg0: i32, %arg1: i32) -> (i32, i32) {
    %c0_i32 = arith.constant 0 : i32
    %c0_i32_0 = arith.constant 0 : i32
    return %c0_i32, %arg0 : i32, i32
  }
}

</mosaic_0001>

<bundles_post_ra>
// kernel: bn_linear.1
= control target key start
LH: loop header
LB: loop body
LE: loop exit
PB: predicated region body
PF: predicated region fallthrough
CT: control target
= control target key end

     0   :  { %s233_s0 = inlined_call_operand.vmem [shape: bf16[8,32], index: 0, kind: input, shape index: {}]   ;;  %s234_s1 = inlined_call_operand.vmem [shape: bf16[32,128], index: 1, kind: input, shape index: {}]   ;;  %s235_s2 = inlined_call_operand.vmem [shape: f32[1,128], index: 2, kind: input, shape index: {}]   ;;  %s236_s3 = inlined_call_operand.vmem [shape: f32[1,128], index: 3, kind: input, shape index: {}]   ;;  %s237_s4 = inlined_call_operand.hbm [shape: f32[8,128], index: 4, kind: output, shape index: {}]  }
   0x1   :  { %v155_v0 = vld [vmem:[%s234_s1 + $0x8] sm:$0xff] }
   0x2   :  { %9 = vsyncpa [#allocation4], 0  ;;  %52 = vmatpush.bf16.msra.mxu0 %v155_v0  ;;  %v154_v1 = vld [vmem:[%s234_s1] sm:$0xff]  ;;  %vm42_vm0 = vcmask 261120   ;;  %s135_s25 = sshll.u32 %s237_s4, 4  ;;  %s136_s25 = int_to_ptr.hbm [resolvable:$true] %s135_s25 }
   0x3   :  { %v25_v2 = vld [vmem:[%s233_s0] sm:$0xf] }
   0x4   :  { %v83_v29 = vld [vmem:[%s235_s2] sm:$0x1]  ;;  %s189_s2 = smov [#allocation3]  }
   0x5   :  { %v96_v33 = vld [vmem:[%s236_s3] sm:$0x1]  ;;  %s133_s3 = sshll.u32 %s189_s2, 4  ;;  %s134_s3 = int_to_ptr.vmem [resolvable:$true] %s133_s3 }
   0x6   :  { %53 = vmatpush.bf16.msra.mxu0 %v154_v1 }
   0x9   :  { %152 = vmatmul.msk.bf16.vlgmr.msra.gmra.mxu0 %vm42_vm0, %v25_v2 }
  0x86   :  { %v55_v3 = vpop.f32.mrf.mxu0 }
  0x87   :  { %v65_v4 = vrot.slane %v55_v3, 4  ;;  %v72_v5 = vmul.f32 %v55_v3, %v55_v3 }
  0x89   :  { %v66_v6 = vadd.f32 %v65_v4, %v55_v3  ;;  %v73_v7 = vrot.slane %v72_v5, 4 }
  0x8b   :  { %v67_v8 = vrot.slane %v66_v6, 2  ;;  %v74_v9 = vadd.f32 %v73_v7, %v72_v5 }
  0x8d   :  { %v68_v10 = vadd.f32 %v67_v8, %v66_v6  ;;  %v75_v11 = vrot.slane %v74_v9, 2 }
  0x8e   :  { %v57_v12 = vpop.f32.mrf.mxu0 }
  0x8f   :  { %v69_v13 = vrot.slane %v68_v10, 1  ;;  %v76_v14 = vadd.f32 %v75_v11, %v74_v9 }
  0x91   :  { %v70_v15 = vadd.f32 %v69_v13, %v68_v10  ;;  %v77_v16 = vrot.slane %v76_v14, 1 }
  0x93   :  { %v71_v17 = vmul.f32 0.125, %v70_v15  ;;  %v78_v18 = vadd.f32 %v77_v16, %v76_v14 }
  0x95   :  { %v79_v19 = vmul.f32 0.125, %v78_v18  ;;  %v80_v20 = vmul.f32 %v71_v17, %v71_v17 }
  0x97   :  { %v81_v21 = vsub.f32 %v79_v19, %v80_v20 }
  0x99   :  { %v82_v22 = vmax.f32 %v81_v21, 0.0 }
  0x9b   :  { %v84_v23 = vadd.f32 1e-05, %v82_v22 }
  0x9d   :  { %157 = vrsqrt.f32 %v84_v23  ;;  %vm91_vm2 = vweird.f32 %v84_v23 }
  0xa3   :  { %v158_v24 = vpop.eup %157 }
  0xa4   :  { %v86_v25 = vmul.f32 %v158_v24, %v84_v23  ;;  %vm92_vm1 = vweird.f32 %v158_v24 }
  0xa5   :  { %vm93_vm3 = vmor %vm91_vm2, %vm92_vm1 }
  0xa6   :  { %v87_v26 = vmul.f32 %v158_v24, %v86_v25 }
  0xa8   :  { %v88_v27 = vmul.f32 0.5, %v87_v26 }
  0xaa   :  { %v89_v28 = vsub.f32 1.5, %v88_v27 }
  0xac   :  { %v90_v30 = vmul.f32 %v158_v24, %v89_v28 }
  0xae   :  { %v94_v31 = vsel %vm93_vm3, %v158_v24, %v90_v30 }
  0xaf   :  { %v95_v32 = vmul.f32 %v94_v31, %v83_v29 }
  0xb1   :  { %v100_v34 = vperm.slane %v95_v32, 0  ;;  %v97_v35 = vmul.f32 %v95_v32, %v71_v17 }
  0xb3   :  { %v98_v36 = vsub.f32 %v96_v33, %v97_v35  ;;  %v102_v37 = vmul.f32 %v100_v34, %v55_v3 }
  0xb5   :  { %v104_v38 = vperm.slane %v98_v36, 0 }
  0xb7   :  { %v106_v39 = vadd.f32 %v104_v38, %v102_v37 }
  0xb9   :  { %v153_v40 = vmul.f32 -1.442695, %v106_v39 }
  0xbb   :  { %159 = vpow2.f32 %v153_v40 }
  0xc1   :  { %v160_v41 = vpop.eup %159 }
  0xc2   :  { %v110_v42 = vadd.f32 1.0, %v160_v41 }
  0xc4   :  { %161 = vrcp.f32 %v110_v42  ;;  %v122_v46 = vand.u32 2147483648, %v110_v42  ;;  %v120_v48 = vand.u32 2147483647, %v110_v42  ;;  %vm116_vm5 = vweird.f32 %v110_v42 }
  0xc6   :  { %v123_v50 = vor.u32 1.1754944e-38, %v122_v46  ;;  %vm121_vm7 = vcmp.eq.f32.partialorder %v120_v48, 8.507059e+37 }
  0xca   :  { %v162_v43 = vpop.eup %161 }
  0xcb   :  { %v112_v44 = vmul.f32 %v162_v43, %v110_v42  ;;  %vm117_vm4 = vweird.f32 %v162_v43 }
  0xcc   :  { %vm118_vm6 = vmor %vm116_vm5, %vm117_vm4 }
  0xcd   :  { %v113_v45 = vsub.f32 1.0, %v112_v44 }
  0xcf   :  { %v114_v47 = vmul.f32 %v162_v43, %v113_v45 }
  0xd1   :  { %v115_v49 = vadd.f32 %v162_v43, %v114_v47 }
  0xd3   :  { %v119_v51 = vsel %vm118_vm6, %v162_v43, %v115_v49 }
  0xd4   :  { %v124_v52 = vsel %vm121_vm7, %v123_v50, %v119_v51 }
  0xd5   :  { %v126_v53 = vmul.f32 %v124_v52, %v106_v39 }
  0xd7   :  { %127 = vst [vmem:[#allocation3] sm:$0xff] %v126_v53 }
  0xd8   :  { %138 = dma.vmem_to_hbm [thread:$0]  %s134_s3, 128, %s136_s25, [#allocation4]  }
  0xd9   :  { %187 = dma.done.wait [#allocation4], 128  }
  0xda   :  { %188 = vsyncadd [#allocation4], 4294967168 }
  0xdb   :  { %143 = vsyncpa [#allocation4], 1 }

</bundles_post_ra>
